<compile_context>
chip_gen: v6e
topology: v6e:2x2x1
jax: 0.10.0
libtpu: 0.0.40
codegen_flags: <defaults>
</compile_context>

<pallas_src>
import functools

import jax
import jax.numpy as jnp
import numpy as np
from jax import lax
from jax.experimental import pallas as pl
from jax.experimental.pallas import tpu as pltpu

EPS = 1e-5  # PyTorch BatchNorm1d default eps


def _hg_kernel(inp_ref, coef3_ref, w1t_ref, wsum_ref, w2t_ref, gamma_ref,
               beta_ref, out_ref):
    B, G, D = inp_ref.shape

    def batch_norm(x3, idx):
        # Training-mode BatchNorm1d(num_groups): per-group stats over
        # (batch, feature); gamma/beta folded into a single scale/shift FMA.
        # TODO(synk): running_mean / running_var buffer updates (training-mode
        # side effect) are not emulated; only the normalization itself is.
        mean = jnp.mean(x3, axis=(0, 2), keepdims=True)
        var = jnp.mean(x3 * x3, axis=(0, 2), keepdims=True) - mean * mean
        scale = gamma_ref[idx] * lax.rsqrt(var + EPS)
        shift = beta_ref[idx] - mean * scale
        return x3 * scale + shift

    x = inp_ref[...]                                   # (B, G, D) f32
    x2 = x.reshape(B * G, D)

    # dense1 -> bn1 -> relu      (bf16 MXU operands, f32 accumulation)
    h2 = jnp.dot(x2.astype(jnp.bfloat16), w1t_ref[...],
                 preferred_element_type=jnp.float32)
    h3 = jnp.maximum(batch_norm(h2.reshape(B, G, D), 0), 0.0)
    h2 = h3.reshape(B * G, D).astype(jnp.bfloat16)

    # graph conv: tile(x,(1,1,9)) @ Wgc.T collapses to one wide matmul because
    # the 9 replicas were pre-summed into wsum (D, 9D) on the host.
    y = jnp.dot(h2, wsum_ref[...], preferred_element_type=jnp.float32)  # (B*G, 9D)

    # `coef_matrix @ out ; out.sum(dim=1)`: with coef3 pre-rearranged on the
    # host, lane-block k of y contracts against coef3[k] over the group axis:
    #   acc[b,o,d] += sum_g coef3[k,b,o,g] * y[b*G+g, k*D+d]
    acc = jnp.zeros((B, G, D), jnp.float32)
    for k in range(9):
        y_k = y[:, k * D:(k + 1) * D].reshape(B, G, D).astype(jnp.bfloat16)
        acc = acc + jnp.einsum('bog,bgd->bod', coef3_ref[k], y_k,
                               preferred_element_type=jnp.float32)

    # bn2 -> relu
    g3 = jnp.maximum(batch_norm(acc, 1), 0.0)

    # dense2 -> bn3 -> residual -> relu
    z2 = jnp.dot(g3.reshape(B * G, D).astype(jnp.bfloat16), w2t_ref[...],
                 preferred_element_type=jnp.float32)
    z3 = batch_norm(z2.reshape(B, G, D), 2)
    out_ref[...] = jnp.maximum(z3 + x, 0.0)


def prepare_weights(w1, wgc, w2):
    """One-time weight preprocessing, hoisted out of the per-call path."""
    D = w1.shape[0]
    w1t = jnp.asarray(w1).T.astype(jnp.bfloat16)            # PyTorch Linear: x @ W.T
    w2t = jnp.asarray(w2).T.astype(jnp.bfloat16)
    # tile(h,(1,1,9)) @ Wgc.T  ==  h @ wsum   with
    #   wsum[e, m] = sum_j Wgc[m, j*D + e]    (exact in real arithmetic)
    wsum = jnp.transpose(jnp.asarray(wgc).reshape(9 * D, 9, D).sum(axis=1))
    return w1t, wsum.astype(jnp.bfloat16), w2t               # wsum: (D, 9D)


@jax.jit
def hg_residual_block(inp, coef, w1t, wsum, w2t, gamma, beta):
    """inp: (B, G, D); coef: (B, 9, G, G); w1t/wsum/w2t from prepare_weights."""
    B, G, D = inp.shape
    # Re-index coef so the torch reshape (B, G, 9D) -> (B, 9, G, D) followed by
    # `coef @ out; out.sum(dim=1)` becomes the per-lane-block contraction used
    # in the kernel.  This is the only per-call preprocessing (a fused gather).
    g_idx = jnp.arange(G)[:, None]
    k_idx = jnp.arange(9)[None, :]
    q = g_idx * 9 + k_idx                               # flat (group, block) index
    kp, gp = q // G, q % G                              # (k', g') after raw reshape
    coef3 = jnp.transpose(coef[:, kp, :, gp], (1, 2, 3, 0)).astype(jnp.bfloat16)

    vmem = pl.BlockSpec(memory_space=pltpu.MemorySpace.VMEM)
    return pl.pallas_call(
        _hg_kernel,
        out_shape=jax.ShapeDtypeStruct((B, G, D), jnp.float32),
        in_specs=[vmem] * 7,
        out_specs=vmem,
    )(inp, coef3, w1t, wsum, w2t, gamma, beta)


def reference(inp, coef, w1, wgc, w2):
    """Plain-JAX transcription of the PyTorch forward (gamma=1, beta=0,
    train-mode BN) with per-dot f32 'highest' matmul precision."""
    B, G, D = inp.shape
    hp = functools.partial(jnp.matmul, precision=lax.Precision.HIGHEST)

    def bn(x):
        mean = x.mean(axis=(0, 2), keepdims=True)
        var = ((x - mean) ** 2).mean(axis=(0, 2), keepdims=True)
        return (x - mean) / jnp.sqrt(var + EPS)

    x = hp(inp, w1.T)
    x = jax.nn.relu(bn(x))
    ex = jnp.tile(x, (1, 1, 9))
    out = hp(ex, wgc.T)
    out = out.reshape(-1, 9, G, D)
    out = hp(coef, out)
    out = out.sum(axis=1)
    x = jax.nn.relu(bn(out))
    x = hp(x, w2.T)
    x = bn(x)
    return jax.nn.relu(x + inp)


if __name__ == "__main__":
    B, G, D = 2, 8, 32                      # batch, num_groups, input_dims
    key = jax.random.PRNGKey(0)
    k0, k1, k2, k3, k4 = jax.random.split(key, 5)

    inp = jax.random.normal(k0, (B, G, D), jnp.float32)
    coef = jax.random.normal(k1, (B, 9, G, G), jnp.float32) / G
    w1 = jax.random.normal(k2, (D, D), jnp.float32) / np.sqrt(D)
    wgc = jax.random.normal(k3, (9 * D, 9 * D), jnp.float32) / np.sqrt(9 * D)
    w2 = jax.random.normal(k4, (D, D), jnp.float32) / np.sqrt(D)
    gamma = jnp.ones((3, 1, G, 1), jnp.float32)   # BatchNorm1d default weight (=1)
    beta = jnp.zeros((3, 1, G, 1), jnp.float32)   # BatchNorm1d default bias   (=0)

    w1t, wsum, w2t = prepare_weights(w1, wgc, w2)   # hoisted, one-time prep
    out = hg_residual_block(inp, coef, w1t, wsum, w2t, gamma, beta)
    out = jax.block_until_ready(out)

    ref = reference(inp, coef, w1, wgc, w2)
    # Kernel uses single-pass bf16 MXU operands (f32 accumulation) while the
    # reference is f32 'highest' precision -> a few-percent tolerance.
    np.testing.assert_allclose(np.asarray(out), np.asarray(ref),
                               rtol=5e-2, atol=5e-2)
    print("KERNEL_OK")
</pallas_src>

<mosaic_0001>
module attributes {stable_mosaic.version = 11 : i64} {
  func.func @_hg_kernel(%arg0: memref<2x8x32xf32, #tpu.memory_space<vmem>>, %arg1: memref<9x2x8x8xbf16, #tpu.memory_space<vmem>>, %arg2: memref<32x32xbf16, #tpu.memory_space<vmem>>, %arg3: memref<32x288xbf16, #tpu.memory_space<vmem>>, %arg4: memref<32x32xbf16, #tpu.memory_space<vmem>>, %arg5: memref<3x1x8x1xf32, #tpu.memory_space<vmem>>, %arg6: memref<3x1x8x1xf32, #tpu.memory_space<vmem>>, %arg7: memref<2x8x32xf32, #tpu.memory_space<vmem>>) attributes {dimension_semantics = [], scalar_prefetch = 0 : i64, scratch_operands = 0 : i64, tpu.core_type = #tpu.core_type<tc>} {
    %c0 = arith.constant 0 : index
    %c0_0 = arith.constant 0 : index
    %c0_1 = arith.constant 0 : index
    %0 = vector.load %arg0[%c0, %c0_0, %c0_1] : memref<2x8x32xf32, #tpu.memory_space<vmem>>, vector<2x8x32xf32>
    %1 = vector.shape_cast %0 : vector<2x8x32xf32> to vector<16x32xf32>
    %2 = arith.truncf %1 : vector<16x32xf32> to vector<16x32xbf16>
    %c0_2 = arith.constant 0 : index
    %c0_3 = arith.constant 0 : index
    %3 = vector.load %arg2[%c0_2, %c0_3] : memref<32x32xbf16, #tpu.memory_space<vmem>>, vector<32x32xbf16>
    %cst = arith.constant dense<0.000000e+00> : vector<16x32xf32>
    %4 = tpu.matmul %2, %3, %cst {dimension_numbers = #tpu.dot_dimension_numbers<[1], [0], [0], [1], [0, 0, 1, 1], [], []>} : vector<16x32xbf16>, vector<32x32xbf16>, vector<16x32xf32> -> vector<16x32xf32>
    %5 = vector.shape_cast %4 : vector<16x32xf32> to vector<2x8x32xf32>
    %cst_4 = arith.constant dense<0.000000e+00> : vector<8xf32>
    %6 = vector.multi_reduction <add>, %5, %cst_4 [0, 2] : vector<2x8x32xf32> to vector<8xf32>
    %7 = vector.shape_cast %6 : vector<8xf32> to vector<1x8x1xf32>
    %cst_5 = arith.constant 6.400000e+01 : f32
    %8 = vector.broadcast %cst_5 : f32 to vector<1x8x1xf32>
    %9 = arith.divf %7, %8 : vector<1x8x1xf32>
    %10 = arith.mulf %5, %5 : vector<2x8x32xf32>
    %cst_6 = arith.constant dense<0.000000e+00> : vector<8xf32>
    %11 = vector.multi_reduction <add>, %10, %cst_6 [0, 2] : vector<2x8x32xf32> to vector<8xf32>
    %12 = vector.shape_cast %11 : vector<8xf32> to vector<1x8x1xf32>
    %cst_7 = arith.constant 6.400000e+01 : f32
    %13 = vector.broadcast %cst_7 : f32 to vector<1x8x1xf32>
    %14 = arith.divf %12, %13 : vector<1x8x1xf32>
    %15 = arith.mulf %9, %9 : vector<1x8x1xf32>
    %16 = arith.subf %14, %15 : vector<1x8x1xf32>
    %c0_8 = arith.constant 0 : index
    %c0_9 = arith.constant 0 : index
    %c0_10 = arith.constant 0 : index
    %c0_11 = arith.constant 0 : index
    %17 = vector.load %arg5[%c0_8, %c0_9, %c0_10, %c0_11] : memref<3x1x8x1xf32, #tpu.memory_space<vmem>>, vector<1x1x8x1xf32>
    %18 = vector.shape_cast %17 : vector<1x1x8x1xf32> to vector<1x8x1xf32>
    %cst_12 = arith.constant 9.99999974E-6 : f32
    %19 = vector.broadcast %cst_12 : f32 to vector<1x8x1xf32>
    %20 = arith.addf %16, %19 : vector<1x8x1xf32>
    %21 = math.rsqrt %20 : vector<1x8x1xf32>
    %22 = arith.mulf %18, %21 : vector<1x8x1xf32>
    %c0_13 = arith.constant 0 : index
    %c0_14 = arith.constant 0 : index
    %c0_15 = arith.constant 0 : index
    %c0_16 = arith.constant 0 : index
    %23 = vector.load %arg6[%c0_13, %c0_14, %c0_15, %c0_16] : memref<3x1x8x1xf32, #tpu.memory_space<vmem>>, vector<1x1x8x1xf32>
    %24 = vector.shape_cast %23 : vector<1x1x8x1xf32> to vector<1x8x1xf32>
    %25 = arith.mulf %9, %22 : vector<1x8x1xf32>
    %26 = arith.subf %24, %25 : vector<1x8x1xf32>
    %27 = vector.broadcast %22 : vector<1x8x1xf32> to vector<2x8x32xf32>
    %28 = arith.mulf %5, %27 : vector<2x8x32xf32>
    %29 = vector.broadcast %26 : vector<1x8x1xf32> to vector<2x8x32xf32>
    %30 = arith.addf %28, %29 : vector<2x8x32xf32>
    %cst_17 = arith.constant 0.000000e+00 : f32
    %31 = vector.broadcast %cst_17 : f32 to vector<2x8x32xf32>
    %32 = arith.maximumf %30, %31 : vector<2x8x32xf32>
    %33 = vector.shape_cast %32 : vector<2x8x32xf32> to vector<16x32xf32>
    %34 = arith.truncf %33 : vector<16x32xf32> to vector<16x32xbf16>
    %c0_18 = arith.constant 0 : index
    %c0_19 = arith.constant 0 : index
    %35 = vector.load %arg3[%c0_18, %c0_19] : memref<32x288xbf16, #tpu.memory_space<vmem>>, vector<32x288xbf16>
    %cst_20 = arith.constant dense<0.000000e+00> : vector<16x288xf32>
    %36 = tpu.matmul %34, %35, %cst_20 {dimension_numbers = #tpu.dot_dimension_numbers<[1], [0], [0], [1], [0, 0, 1, 1], [], []>} : vector<16x32xbf16>, vector<32x288xbf16>, vector<16x288xf32> -> vector<16x288xf32>
    %cst_21 = arith.constant 0.000000e+00 : f32
    %37 = vector.broadcast %cst_21 : f32 to vector<2x8x32xf32>
    %38 = vector.extract_strided_slice %36 {offsets = [0, 0], sizes = [16, 32], strides = [1, 1]} : vector<16x288xf32> to vector<16x32xf32>
    %39 = vector.shape_cast %38 : vector<16x32xf32> to vector<2x8x32xf32>
    %40 = arith.truncf %39 : vector<2x8x32xf32> to vector<2x8x32xbf16>
    %c0_22 = arith.constant 0 : index
    %c0_23 = arith.constant 0 : index
    %c0_24 = arith.constant 0 : index
    %c0_25 = arith.constant 0 : index
    %41 = vector.load %arg1[%c0_22, %c0_23, %c0_24, %c0_25] : memref<9x2x8x8xbf16, #tpu.memory_space<vmem>>, vector<1x2x8x8xbf16>
    %42 = vector.shape_cast %41 : vector<1x2x8x8xbf16> to vector<2x8x8xbf16>
    "tpu.trace_start"() <{level = 10 : i32, message = "bog,bgd->bod"}> : () -> ()
    %cst_26 = arith.constant dense<0.000000e+00> : vector<2x8x32xf32>
    %43 = tpu.matmul %42, %40, %cst_26 {dimension_numbers = #tpu.dot_dimension_numbers<[2], [1], [1], [2], [0, 0, 0, 1, 1, 2], [0], [0]>} : vector<2x8x8xbf16>, vector<2x8x32xbf16>, vector<2x8x32xf32> -> vector<2x8x32xf32>
    "tpu.trace_stop"() : () -> ()
    %44 = arith.addf %37, %43 : vector<2x8x32xf32>
    %45 = vector.extract_strided_slice %36 {offsets = [0, 32], sizes = [16, 32], strides = [1, 1]} : vector<16x288xf32> to vector<16x32xf32>
    %46 = vector.shape_cast %45 : vector<16x32xf32> to vector<2x8x32xf32>
    %47 = arith.truncf %46 : vector<2x8x32xf32> to vector<2x8x32xbf16>
    %c1 = arith.constant 1 : index
    %c0_27 = arith.constant 0 : index
    %c0_28 = arith.constant 0 : index
    %c0_29 = arith.constant 0 : index
    %48 = vector.load %arg1[%c1, %c0_27, %c0_28, %c0_29] : memref<9x2x8x8xbf16, #tpu.memory_space<vmem>>, vector<1x2x8x8xbf16>
    %49 = vector.shape_cast %48 : vector<1x2x8x8xbf16> to vector<2x8x8xbf16>
    "tpu.trace_start"() <{level = 10 : i32, message = "bog,bgd->bod"}> : () -> ()
    %cst_30 = arith.constant dense<0.000000e+00> : vector<2x8x32xf32>
    %50 = tpu.matmul %49, %47, %cst_30 {dimension_numbers = #tpu.dot_dimension_numbers<[2], [1], [1], [2], [0, 0, 0, 1, 1, 2], [0], [0]>} : vector<2x8x8xbf16>, vector<2x8x32xbf16>, vector<2x8x32xf32> -> vector<2x8x32xf32>
    "tpu.trace_stop"() : () -> ()
    %51 = arith.addf %44, %50 : vector<2x8x32xf32>
    %52 = vector.extract_strided_slice %36 {offsets = [0, 64], sizes = [16, 32], strides = [1, 1]} : vector<16x288xf32> to vector<16x32xf32>
    %53 = vector.shape_cast %52 : vector<16x32xf32> to vector<2x8x32xf32>
    %54 = arith.truncf %53 : vector<2x8x32xf32> to vector<2x8x32xbf16>
    %c2 = arith.constant 2 : index
    %c0_31 = arith.constant 0 : index
    %c0_32 = arith.constant 0 : index
    %c0_33 = arith.constant 0 : index
    %55 = vector.load %arg1[%c2, %c0_31, %c0_32, %c0_33] : memref<9x2x8x8xbf16, #tpu.memory_space<vmem>>, vector<1x2x8x8xbf16>
    %56 = vector.shape_cast %55 : vector<1x2x8x8xbf16> to vector<2x8x8xbf16>
    "tpu.trace_start"() <{level = 10 : i32, message = "bog,bgd->bod"}> : () -> ()
    %cst_34 = arith.constant dense<0.000000e+00> : vector<2x8x32xf32>
    %57 = tpu.matmul %56, %54, %cst_34 {dimension_numbers = #tpu.dot_dimension_numbers<[2], [1], [1], [2], [0, 0, 0, 1, 1, 2], [0], [0]>} : vector<2x8x8xbf16>, vector<2x8x32xbf16>, vector<2x8x32xf32> -> vector<2x8x32xf32>
    "tpu.trace_stop"() : () -> ()
    %58 = arith.addf %51, %57 : vector<2x8x32xf32>
    %59 = vector.extract_strided_slice %36 {offsets = [0, 96], sizes = [16, 32], strides = [1, 1]} : vector<16x288xf32> to vector<16x32xf32>
    %60 = vector.shape_cast %59 : vector<16x32xf32> to vector<2x8x32xf32>
    %61 = arith.truncf %60 : vector<2x8x32xf32> to vector<2x8x32xbf16>
    %c3 = arith.constant 3 : index
    %c0_35 = arith.constant 0 : index
    %c0_36 = arith.constant 0 : index
    %c0_37 = arith.constant 0 : index
    %62 = vector.load %arg1[%c3, %c0_35, %c0_36, %c0_37] : memref<9x2x8x8xbf16, #tpu.memory_space<vmem>>, vector<1x2x8x8xbf16>
    %63 = vector.shape_cast %62 : vector<1x2x8x8xbf16> to vector<2x8x8xbf16>
    "tpu.trace_start"() <{level = 10 : i32, message = "bog,bgd->bod"}> : () -> ()
    %cst_38 = arith.constant dense<0.000000e+00> : vector<2x8x32xf32>
    %64 = tpu.matmul %63, %61, %cst_38 {dimension_numbers = #tpu.dot_dimension_numbers<[2], [1], [1], [2], [0, 0, 0, 1, 1, 2], [0], [0]>} : vector<2x8x8xbf16>, vector<2x8x32xbf16>, vector<2x8x32xf32> -> vector<2x8x32xf32>
    "tpu.trace_stop"() : () -> ()
    %65 = arith.addf %58, %64 : vector<2x8x32xf32>
    %66 = vector.extract_strided_slice %36 {offsets = [0, 128], sizes = [16, 32], strides = [1, 1]} : vector<16x288xf32> to vector<16x32xf32>
    %67 = vector.shape_cast %66 : vector<16x32xf32> to vector<2x8x32xf32>
    %68 = arith.truncf %67 : vector<2x8x32xf32> to vector<2x8x32xbf16>
    %c4 = arith.constant 4 : index
    %c0_39 = arith.constant 0 : index
    %c0_40 = arith.constant 0 : index
    %c0_41 = arith.constant 0 : index
    %69 = vector.load %arg1[%c4, %c0_39, %c0_40, %c0_41] : memref<9x2x8x8xbf16, #tpu.memory_space<vmem>>, vector<1x2x8x8xbf16>
    %70 = vector.shape_cast %69 : vector<1x2x8x8xbf16> to vector<2x8x8xbf16>
    "tpu.trace_start"() <{level = 10 : i32, message = "bog,bgd->bod"}> : () -> ()
    %cst_42 = arith.constant dense<0.000000e+00> : vector<2x8x32xf32>
    %71 = tpu.matmul %70, %68, %cst_42 {dimension_numbers = #tpu.dot_dimension_numbers<[2], [1], [1], [2], [0, 0, 0, 1, 1, 2], [0], [0]>} : vector<2x8x8xbf16>, vector<2x8x32xbf16>, vector<2x8x32xf32> -> vector<2x8x32xf32>
    "tpu.trace_stop"() : () -> ()
    %72 = arith.addf %65, %71 : vector<2x8x32xf32>
    %73 = vector.extract_strided_slice %36 {offsets = [0, 160], sizes = [16, 32], strides = [1, 1]} : vector<16x288xf32> to vector<16x32xf32>
    %74 = vector.shape_cast %73 : vector<16x32xf32> to vector<2x8x32xf32>
    %75 = arith.truncf %74 : vector<2x8x32xf32> to vector<2x8x32xbf16>
    %c5 = arith.constant 5 : index
    %c0_43 = arith.constant 0 : index
    %c0_44 = arith.constant 0 : index
    %c0_45 = arith.constant 0 : index
    %76 = vector.load %arg1[%c5, %c0_43, %c0_44, %c0_45] : memref<9x2x8x8xbf16, #tpu.memory_space<vmem>>, vector<1x2x8x8xbf16>
    %77 = vector.shape_cast %76 : vector<1x2x8x8xbf16> to vector<2x8x8xbf16>
    "tpu.trace_start"() <{level = 10 : i32, message = "bog,bgd->bod"}> : () -> ()
    %cst_46 = arith.constant dense<0.000000e+00> : vector<2x8x32xf32>
    %78 = tpu.matmul %77, %75, %cst_46 {dimension_numbers = #tpu.dot_dimension_numbers<[2], [1], [1], [2], [0, 0, 0, 1, 1, 2], [0], [0]>} : vector<2x8x8xbf16>, vector<2x8x32xbf16>, vector<2x8x32xf32> -> vector<2x8x32xf32>
    "tpu.trace_stop"() : () -> ()
    %79 = arith.addf %72, %78 : vector<2x8x32xf32>
    %80 = vector.extract_strided_slice %36 {offsets = [0, 192], sizes = [16, 32], strides = [1, 1]} : vector<16x288xf32> to vector<16x32xf32>
    %81 = vector.shape_cast %80 : vector<16x32xf32> to vector<2x8x32xf32>
    %82 = arith.truncf %81 : vector<2x8x32xf32> to vector<2x8x32xbf16>
    %c6 = arith.constant 6 : index
    %c0_47 = arith.constant 0 : index
    %c0_48 = arith.constant 0 : index
    %c0_49 = arith.constant 0 : index
    %83 = vector.load %arg1[%c6, %c0_47, %c0_48, %c0_49] : memref<9x2x8x8xbf16, #tpu.memory_space<vmem>>, vector<1x2x8x8xbf16>
    %84 = vector.shape_cast %83 : vector<1x2x8x8xbf16> to vector<2x8x8xbf16>
    "tpu.trace_start"() <{level = 10 : i32, message = "bog,bgd->bod"}> : () -> ()
    %cst_50 = arith.constant dense<0.000000e+00> : vector<2x8x32xf32>
    %85 = tpu.matmul %84, %82, %cst_50 {dimension_numbers = #tpu.dot_dimension_numbers<[2], [1], [1], [2], [0, 0, 0, 1, 1, 2], [0], [0]>} : vector<2x8x8xbf16>, vector<2x8x32xbf16>, vector<2x8x32xf32> -> vector<2x8x32xf32>
    "tpu.trace_stop"() : () -> ()
    %86 = arith.addf %79, %85 : vector<2x8x32xf32>
    %87 = vector.extract_strided_slice %36 {offsets = [0, 224], sizes = [16, 32], strides = [1, 1]} : vector<16x288xf32> to vector<16x32xf32>
    %88 = vector.shape_cast %87 : vector<16x32xf32> to vector<2x8x32xf32>
    %89 = arith.truncf %88 : vector<2x8x32xf32> to vector<2x8x32xbf16>
    %c7 = arith.constant 7 : index
    %c0_51 = arith.constant 0 : index
    %c0_52 = arith.constant 0 : index
    %c0_53 = arith.constant 0 : index
    %90 = vector.load %arg1[%c7, %c0_51, %c0_52, %c0_53] : memref<9x2x8x8xbf16, #tpu.memory_space<vmem>>, vector<1x2x8x8xbf16>
    %91 = vector.shape_cast %90 : vector<1x2x8x8xbf16> to vector<2x8x8xbf16>
    "tpu.trace_start"() <{level = 10 : i32, message = "bog,bgd->bod"}> : () -> ()
    %cst_54 = arith.constant dense<0.000000e+00> : vector<2x8x32xf32>
    %92 = tpu.matmul %91, %89, %cst_54 {dimension_numbers = #tpu.dot_dimension_numbers<[2], [1], [1], [2], [0, 0, 0, 1, 1, 2], [0], [0]>} : vector<2x8x8xbf16>, vector<2x8x32xbf16>, vector<2x8x32xf32> -> vector<2x8x32xf32>
    "tpu.trace_stop"() : () -> ()
    %93 = arith.addf %86, %92 : vector<2x8x32xf32>
    %94 = vector.extract_strided_slice %36 {offsets = [0, 256], sizes = [16, 32], strides = [1, 1]} : vector<16x288xf32> to vector<16x32xf32>
    %95 = vector.shape_cast %94 : vector<16x32xf32> to vector<2x8x32xf32>
    %96 = arith.truncf %95 : vector<2x8x32xf32> to vector<2x8x32xbf16>
    %c8 = arith.constant 8 : index
    %c0_55 = arith.constant 0 : index
    %c0_56 = arith.constant 0 : index
    %c0_57 = arith.constant 0 : index
    %97 = vector.load %arg1[%c8, %c0_55, %c0_56, %c0_57] : memref<9x2x8x8xbf16, #tpu.memory_space<vmem>>, vector<1x2x8x8xbf16>
    %98 = vector.shape_cast %97 : vector<1x2x8x8xbf16> to vector<2x8x8xbf16>
    "tpu.trace_start"() <{level = 10 : i32, message = "bog,bgd->bod"}> : () -> ()
    %cst_58 = arith.constant dense<0.000000e+00> : vector<2x8x32xf32>
    %99 = tpu.matmul %98, %96, %cst_58 {dimension_numbers = #tpu.dot_dimension_numbers<[2], [1], [1], [2], [0, 0, 0, 1, 1, 2], [0], [0]>} : vector<2x8x8xbf16>, vector<2x8x32xbf16>, vector<2x8x32xf32> -> vector<2x8x32xf32>
    "tpu.trace_stop"() : () -> ()
    %100 = arith.addf %93, %99 : vector<2x8x32xf32>
    %cst_59 = arith.constant dense<0.000000e+00> : vector<8xf32>
    %101 = vector.multi_reduction <add>, %100, %cst_59 [0, 2] : vector<2x8x32xf32> to vector<8xf32>
    %102 = vector.shape_cast %101 : vector<8xf32> to vector<1x8x1xf32>
    %cst_60 = arith.constant 6.400000e+01 : f32
    %103 = vector.broadcast %cst_60 : f32 to vector<1x8x1xf32>
    %104 = arith.divf %102, %103 : vector<1x8x1xf32>
    %105 = arith.mulf %100, %100 : vector<2x8x32xf32>
    %cst_61 = arith.constant dense<0.000000e+00> : vector<8xf32>
    %106 = vector.multi_reduction <add>, %105, %cst_61 [0, 2] : vector<2x8x32xf32> to vector<8xf32>
    %107 = vector.shape_cast %106 : vector<8xf32> to vector<1x8x1xf32>
    %cst_62 = arith.constant 6.400000e+01 : f32
    %108 = vector.broadcast %cst_62 : f32 to vector<1x8x1xf32>
    %109 = arith.divf %107, %108 : vector<1x8x1xf32>
    %110 = arith.mulf %104, %104 : vector<1x8x1xf32>
    %111 = arith.subf %109, %110 : vector<1x8x1xf32>
    %c1_63 = arith.constant 1 : index
    %c0_64 = arith.constant 0 : index
    %c0_65 = arith.constant 0 : index
    %c0_66 = arith.constant 0 : index
    %112 = vector.load %arg5[%c1_63, %c0_64, %c0_65, %c0_66] : memref<3x1x8x1xf32, #tpu.memory_space<vmem>>, vector<1x1x8x1xf32>
    %113 = vector.shape_cast %112 : vector<1x1x8x1xf32> to vector<1x8x1xf32>
    %cst_67 = arith.constant 9.99999974E-6 : f32
    %114 = vector.broadcast %cst_67 : f32 to vector<1x8x1xf32>
    %115 = arith.addf %111, %114 : vector<1x8x1xf32>
    %116 = math.rsqrt %115 : vector<1x8x1xf32>
    %117 = arith.mulf %113, %116 : vector<1x8x1xf32>
    %c1_68 = arith.constant 1 : index
    %c0_69 = arith.constant 0 : index
    %c0_70 = arith.constant 0 : index
    %c0_71 = arith.constant 0 : index
    %118 = vector.load %arg6[%c1_68, %c0_69, %c0_70, %c0_71] : memref<3x1x8x1xf32, #tpu.memory_space<vmem>>, vector<1x1x8x1xf32>
    %119 = vector.shape_cast %118 : vector<1x1x8x1xf32> to vector<1x8x1xf32>
    %120 = arith.mulf %104, %117 : vector<1x8x1xf32>
    %121 = arith.subf %119, %120 : vector<1x8x1xf32>
    %122 = vector.broadcast %117 : vector<1x8x1xf32> to vector<2x8x32xf32>
    %123 = arith.mulf %100, %122 : vector<2x8x32xf32>
    %124 = vector.broadcast %121 : vector<1x8x1xf32> to vector<2x8x32xf32>
    %125 = arith.addf %123, %124 : vector<2x8x32xf32>
    %cst_72 = arith.constant 0.000000e+00 : f32
    %126 = vector.broadcast %cst_72 : f32 to vector<2x8x32xf32>
    %127 = arith.maximumf %125, %126 : vector<2x8x32xf32>
    %128 = vector.shape_cast %127 : vector<2x8x32xf32> to vector<16x32xf32>
    %129 = arith.truncf %128 : vector<16x32xf32> to vector<16x32xbf16>
    %c0_73 = arith.constant 0 : index
    %c0_74 = arith.constant 0 : index
    %130 = vector.load %arg4[%c0_73, %c0_74] : memref<32x32xbf16, #tpu.memory_space<vmem>>, vector<32x32xbf16>
    %cst_75 = arith.constant dense<0.000000e+00> : vector<16x32xf32>
    %131 = tpu.matmul %129, %130, %cst_75 {dimension_numbers = #tpu.dot_dimension_numbers<[1], [0], [0], [1], [0, 0, 1, 1], [], []>} : vector<16x32xbf16>, vector<32x32xbf16>, vector<16x32xf32> -> vector<16x32xf32>
    %132 = vector.shape_cast %131 : vector<16x32xf32> to vector<2x8x32xf32>
    %cst_76 = arith.constant dense<0.000000e+00> : vector<8xf32>
    %133 = vector.multi_reduction <add>, %132, %cst_76 [0, 2] : vector<2x8x32xf32> to vector<8xf32>
    %134 = vector.shape_cast %133 : vector<8xf32> to vector<1x8x1xf32>
    %cst_77 = arith.constant 6.400000e+01 : f32
    %135 = vector.broadcast %cst_77 : f32 to vector<1x8x1xf32>
    %136 = arith.divf %134, %135 : vector<1x8x1xf32>
    %137 = arith.mulf %132, %132 : vector<2x8x32xf32>
    %cst_78 = arith.constant dense<0.000000e+00> : vector<8xf32>
    %138 = vector.multi_reduction <add>, %137, %cst_78 [0, 2] : vector<2x8x32xf32> to vector<8xf32>
    %139 = vector.shape_cast %138 : vector<8xf32> to vector<1x8x1xf32>
    %cst_79 = arith.constant 6.400000e+01 : f32
    %140 = vector.broadcast %cst_79 : f32 to vector<1x8x1xf32>
    %141 = arith.divf %139, %140 : vector<1x8x1xf32>
    %142 = arith.mulf %136, %136 : vector<1x8x1xf32>
    %143 = arith.subf %141, %142 : vector<1x8x1xf32>
    %c2_80 = arith.constant 2 : index
    %c0_81 = arith.constant 0 : index
    %c0_82 = arith.constant 0 : index
    %c0_83 = arith.constant 0 : index
    %144 = vector.load %arg5[%c2_80, %c0_81, %c0_82, %c0_83] : memref<3x1x8x1xf32, #tpu.memory_space<vmem>>, vector<1x1x8x1xf32>
    %145 = vector.shape_cast %144 : vector<1x1x8x1xf32> to vector<1x8x1xf32>
    %cst_84 = arith.constant 9.99999974E-6 : f32
    %146 = vector.broadcast %cst_84 : f32 to vector<1x8x1xf32>
    %147 = arith.addf %143, %146 : vector<1x8x1xf32>
    %148 = math.rsqrt %147 : vector<1x8x1xf32>
    %149 = arith.mulf %145, %148 : vector<1x8x1xf32>
    %c2_85 = arith.constant 2 : index
    %c0_86 = arith.constant 0 : index
    %c0_87 = arith.constant 0 : index
    %c0_88 = arith.constant 0 : index
    %150 = vector.load %arg6[%c2_85, %c0_86, %c0_87, %c0_88] : memref<3x1x8x1xf32, #tpu.memory_space<vmem>>, vector<1x1x8x1xf32>
    %151 = vector.shape_cast %150 : vector<1x1x8x1xf32> to vector<1x8x1xf32>
    %152 = arith.mulf %136, %149 : vector<1x8x1xf32>
    %153 = arith.subf %151, %152 : vector<1x8x1xf32>
    %154 = vector.broadcast %149 : vector<1x8x1xf32> to vector<2x8x32xf32>
    %155 = arith.mulf %132, %154 : vector<2x8x32xf32>
    %156 = vector.broadcast %153 : vector<1x8x1xf32> to vector<2x8x32xf32>
    %157 = arith.addf %155, %156 : vector<2x8x32xf32>
    %158 = arith.addf %157, %0 : vector<2x8x32xf32>
    %cst_89 = arith.constant 0.000000e+00 : f32
    %159 = vector.broadcast %cst_89 : f32 to vector<2x8x32xf32>
    %160 = arith.maximumf %158, %159 : vector<2x8x32xf32>
    %c0_90 = arith.constant 0 : index
    %c0_91 = arith.constant 0 : index
    %c0_92 = arith.constant 0 : index
    %161 = vector.load %arg7[%c0_90, %c0_91, %c0_92] : memref<2x8x32xf32, #tpu.memory_space<vmem>>, vector<2x8x32xf32>
    tpu.vector_store %arg7[%c0_90, %c0_91, %c0_92], %160 {strides = array<i32>} : memref<2x8x32xf32, #tpu.memory_space<vmem>>, vector<2x8x32xf32>,
    return
  }
}

</mosaic_0001>

<bundles_post_ra>
// kernel: hg_residual_block.1
= control target key start
LH: loop header
LB: loop body
LE: loop exit
PB: predicated region body
PF: predicated region fallthrough
CT: control target
= control target key end

     0   :  { %v1607_v1 = vmov 0.0   ;;  %vm1608_vm0 = vmmov 0   ;;  %vm47_vm1 = vcmask 261120   ;;  %s1908_s0 = inlined_call_operand.vmem [shape: f32[2,8,32], index: 0, kind: input, shape index: {}]   ;;  %s1909_s1 = inlined_call_operand.vmem [shape: bf16[9,2,8,8], index: 1, kind: input, shape index: {}]   ;;  %s1910_s2 = inlined_call_operand.vmem [shape: bf16[32,32], index: 2, kind: input, shape index: {}]   ;;  %s1911_s3 = inlined_call_operand.vmem [shape: bf16[32,288], index: 3, kind: input, shape index: {}]   ;;  %s1912_s4 = inlined_call_operand.vmem [shape: bf16[32,32], index: 4, kind: input, shape index: {}]   ;;  %s1913_s5 = inlined_call_operand.vmem [shape: f32[3,1,8,1], index: 5, kind: input, shape index: {}]   ;;  %s1914_s6 = inlined_call_operand.vmem [shape: f32[3,1,8,1], index: 6, kind: input, shape index: {}]   ;;  %s1915_s7 = inlined_call_operand.hbm [shape: f32[2,8,32], index: 7, kind: output, shape index: {}]  }
   0x1   :  { %v1567_v0 = vld [vmem:[%s1910_s2 + $0x8] sm:$0xff]   ;;  %1424 = vmatprep.subr.bf16.mxu0 %v1607_v1  ;;  %v1568_v2 = vld [vmem:[%s1910_s2] sm:$0xff]   ;;  %1428 = vmatprep.mubr.msk.bf16.mxu0 %vm1608_vm0, %v1607_v1 }
   0x2   :  { %1425 = vmatpush3.bf16.msra.mxu0 %v1567_v0  ;;  %v1668_v3 = vld [vmem:[%s1908_s0] sm:$0xff]  ;;  %v1673_v4 = vld [vmem:[%s1908_s0 + $0x8] sm:$0xff] }
   0x3   :  { %1426 = vmatprep.subr.bf16.mxu0 %v1607_v1  ;;  %v30_v5 = vpack.c.bf16 %v1673_v4, %v1668_v3 }
   0x6   :  { %1427 = vmatpush3.bf16.msra.mxu0 %v1568_v2 }
   0x7   :  { %12 = vsyncpa [#allocation3], 0  ;;  %1432 = vmatprep.subr.bf16.mxu0 %v1607_v1  ;;  %v1609_v18 = vmov 0   ;;  %v109_v26 = vld [vmem:[%s1913_s5] sm:$0xff]  ;;  %v1569_v27 = vld [vmem:[%s1911_s3 + $0x1c] ss:$12 sps:$4 sm:$0xff]  }
   0x8   :  { %1565 = vset.pattern.permute.xlu1 %v1609_v18  ;;  %208 = vmatprep.mubr.bf16.mxu1 %v1609_v18  ;;  %v1571_v28 = vld [vmem:[%s1911_s3 + $0x18] ss:$12 sps:$4 sm:$0xff]   ;;  %v1572_v29 = vld [vmem:[%s1911_s3 + $0x20] ss:$12 sps:$4 sm:$0xff]   ;;  %v1576_v36 = vld [vmem:[%s1911_s3 + $0x8] ss:$12 sps:$4 sm:$0xff]  }
   0x9   :  { %1429 = vmatmul.mubr.msk.bf16.vlgmr.msra.gmra.mxu0 %vm47_vm1, %v30_v5  ;;  %1566 = vset.pattern.permute.xlu0 %v1609_v18  ;;  %v113_v32 = vld [vmem:[%s1914_s6] sm:$0xff]  ;;  %vm274_vm2 = vcmask 1043456   ;;  %s1611_s23 = smov 64   ;;  %s1612_s24 = smov 32   ;;  %v1338_v63 = vld [vmem:[%s1909_s1 + $0x8] sm:$0xf] }
   0xa   :  { %1436 = vmatprep.mubr.msk.bf16.mxu0 %vm1608_vm0, %v1607_v1  ;;  %188 = vmatprep.subr.bf16.mxu1 %v1569_v27  ;;  %v1573_v34 = vld [vmem:[%s1911_s3 + $0x4] ss:$12 sps:$4 sm:$0xff]   ;;  %v1575_v35 = vld [vmem:[%s1911_s3] ss:$12 sps:$4 sm:$0xff]   ;;  %s1610_s3 = smov 96   ;;  %vm270_vm3 = vcmask 64512  }
   0xb   :  { %1433 = vmatpush3.bf16.msra.mxu0 %v1572_v29  ;;  %189 = vmatpush1.bf16.msra.mxu1 %v1571_v28  ;;  %v1345_v18 = vld [vmem:[%s1909_s1 + $0x14] sm:$0xf]  ;;  %v1353_v28 = vld [vmem:[%s1909_s1 + $0x24] sm:$0xf]  ;;  %s1613_s20 = smov [#allocation2]  }
   0xc   :  { %1434 = vmatprep.subr.bf16.mxu0 %v1607_v1  ;;  %190 = vmatprep.subr.bf16.mxu1 %v1573_v34  ;;  %v1357_v34 = vld [vmem:[%s1909_s1 + $0x2c] sm:$0xf]  ;;  %s1316_s21 = sshll.u32 %s1613_s20, 4  ;;  %s1317_s21 = int_to_ptr.vmem [resolvable:$true] %s1316_s21 }
   0xd   :  { %p1590_p1 = scmp.lt.s32.totalorder %s1317_s21, %s1317_s21 }
   0xf   :  { %191 = vmatpush1.bf16.msra.mxu1 %v1575_v35  ;;  %1435 = vmatpush3.bf16.msra.mxu0 %v1576_v36 }
  0x10   :  { %1440 = vmatprep.subr.bf16.mxu1 %v1607_v1  ;;  %1446 = vmatprep.subr.bf16.mxu0 %v1607_v1 }
  0xc9   :  { %v85_v6 = vpop.f32.mrf.mxu0 }
  0xca   :  { %v99_v9 = vmul.f32 %v85_v6, %v85_v6  ;;  %v92_v11 = vsel %vm47_vm1, %v85_v6, 0.0 }
  0xcb   :  { %v1430_v7 = vpop.f32.mrf.mxu0 }
  0xcc   :  { %v101_v16 = vsel %vm47_vm1, %v99_v9, 0.0  ;;  %v262_v9 = vld [vmem:[%s1909_s1] sm:$0xf] }
  0xcd   :  { %v88_v8 = vpop.f32.mrf.mxu0 }
  0xce   :  { %v100_v10 = vmul.f32 %v88_v8, %v88_v8  ;;  %v93_v12 = vsel %vm47_vm1, %v88_v8, 0.0 }
  0xcf   :  { %v1431_v13 = vpop.f32.mrf.mxu0  ;;  %v94_v14 = vadd.f32 %v93_v12, %v92_v11  ;;  %v263_v12 = vld [vmem:[%s1909_s1 + $0x4] sm:$0xf] }
  0xd0   :  { %v102_v15 = vsel %vm47_vm1, %v100_v10, 0.0 }
  0xd1   :  { %95 = vadd.xlane.f32.xlu0 %v94_v14  ;;  %v103_v17 = vadd.f32 %v102_v15, %v101_v16  ;;  %v1344_v15 = vld [vmem:[%s1909_s1 + $0x10] sm:$0xf] }
  0xd5   :  { %104 = vadd.xlane.f32.xlu0 %v103_v17 }
 0x15a   :  { %v96_v19 = vpop.xlane.xlu0 %95 }
 0x15b   :  { %v98_v20 = vmul.f32 0.015625, %v96_v19 }
 0x15d   :  { %v107_v22 = vmul.f32 %v98_v20, %v98_v20 }
 0x15e   :  { %v105_v21 = vpop.xlane.xlu0 %104 }
 0x15f   :  { %v106_v23 = vmul.f32 0.015625, %v105_v21 }
 0x161   :  { %v108_v24 = vsub.f32 %v106_v23, %v107_v22  ;;  %v1349_v22 = vld [vmem:[%s1909_s1 + $0x1c] sm:$0xf] }
 0x163   :  { %v110_v25 = vadd.f32 1e-05, %v108_v24 }
 0x165   :  { %1579 = vrsqrt.f32 %v110_v25  ;;  %v1352_v25 = vld [vmem:[%s1909_s1 + $0x20] sm:$0xf] }
 0x172   :  { %v1580_v30 = vpop.eup %1579 }
 0x173   :  { %v112_v31 = vmul.f32 %v1580_v30, %v109_v26 }
 0x175   :  { %118 = vperm.xlu1 %1565, %v112_v31   ;;  %v114_v33 = vmul.f32 %v112_v31, %v98_v20  ;;  %v1348_v20 = vld [vmem:[%s1909_s1 + $0x18] sm:$0xf]  ;;  %v1356_v31 = vld [vmem:[%s1909_s1 + $0x28] sm:$0xf] }
 0x177   :  { %v115_v37 = vsub.f32 %v113_v32, %v114_v33 }
 0x179   :  { %125 = vperm.xlu1 %1565, %v115_v37   ;;  %v1360_v37 = vld [vmem:[%s1909_s1 + $0x30] sm:$0xf] }
 0x1f0   :  { %v119_v38 = vpop.permute.xlu1 %118 }
 0x1f1   :  { %v121_v39 = vmul.f32 %v119_v38, %v85_v6  ;;  %v122_v40 = vmul.f32 %v119_v38, %v88_v8  ;;  %v1339_v6 = vld [vmem:[%s1909_s1 + $0xc] sm:$0xf] }
 0x1f4   :  { %v126_v41 = vpop.permute.xlu1 %125 }
 0x1f5   :  { %v128_v42 = vadd.f32 %v126_v41, %v121_v39  ;;  %v129_v43 = vadd.f32 %v126_v41, %v122_v40  ;;  %v1361_v40 = vld [vmem:[%s1909_s1 + $0x34] sm:$0xf] }
 0x1f7   :  { %v130_v44 = vmax.f32 %v128_v42, 0.0  ;;  %v131_v45 = vmax.f32 %v129_v43, 0.0  ;;  %v1364_v43 = vld [vmem:[%s1909_s1 + $0x38] sm:$0xf] }
 0x1f9   :  { %v132_v46 = vpack.c.bf16 %v131_v45, %v130_v44  ;;  %v1365_v45 = vld [vmem:[%s1909_s1 + $0x3c] sm:$0xf] }
 0x1fb   :  { %1336 = vmatmul.mubr.msk.bf16.vlgmr.msra.gmra.mxu1 %vm47_vm1, %v132_v46  ;;  %1437 = vmatmul.mubr.msk.bf16.vlgmr.msra.gmra.mxu0 %vm47_vm1, %v132_v46  ;;  %v1368_v46 = vld [vmem:[%s1909_s1 + $0x40] sm:$0xf] }
 0x1fc   :  { %1442 = vmatprep.mubr.msk.bf16.mxu1 %vm1608_vm0, %v1607_v1  ;;  %1448 = vmatprep.mubr.msk.bf16.mxu0 %vm1608_vm0, %v1607_v1 }
 0x2bb   :  { %v210_v47 = vpop.f32.mrf.mxu1  ;;  %v1719_v48 = vpop.f32.mrf.mxu0 }
 0x2bc   :  { %v260_v49 = vpack.c.bf16 %v210_v47, %v210_v47  ;;  %v1065_v41 = vpack.c.bf16 %v1719_v48, %v1719_v48  ;;  %v1369_v47 = vld [vmem:[%s1909_s1 + $0x44] sm:$0xf] }
 0x2bd   :  { %v212_v50 = vpop.f32.mrf.mxu1  ;;  %v1438_v51 = vpop.f32.mrf.mxu0 }
 0x2be   :  { %268 = vrot.lane.b32.xlu0 %v260_v49, %s1610_s3  ;;  %v661_v60 = vpack.c.bf16 %v212_v50, %v212_v50  ;;  %v371_v5 = vsel %vm274_vm2, %v260_v49, 0  ;;  %v1074_v44 = vsel %vm274_vm2, %v1065_v41, 0 }
 0x2bf   :  { %v214_v52 = vpop.f32.mrf.mxu1  ;;  %v256_v53 = vpop.f32.mrf.mxu0 }
 0x2c0   :  { %v261_v54 = vpack.c.bf16 %v214_v52, %v214_v52  ;;  %v1066_v55 = vpack.c.bf16 %v256_v53, %v256_v53  ;;  %v670_v21 = vsel %vm274_vm2, %v661_v60, 0 }
 0x2c1   :  { %v216_v56 = vpop.f32.mrf.mxu1  ;;  %v1439_v57 = vpop.f32.mrf.mxu0 }
 0x2c2   :  { %v1722_v58 = vsel %vm274_vm2, %v1066_v55, 0  ;;  %v1724_v59 = vpack.c.bf16 %v216_v56, %v216_v56  ;;  %319 = vrot.lane.b32.xlu1 %v261_v54, %s1610_s3  ;;  %v417_v8 = vsel %vm274_vm2, %v261_v54, 0 }
 0x2c4   :  { %813 = vrot.lane.b32.xlu0 %v1724_v59, %s1610_s3  ;;  %v716_v23 = vsel %vm274_vm2, %v1724_v59, 0 }
 0x2c6   :  { %462 = vrot.lane.b32.xlu1 %v260_v49, %s1611_s23 }
 0x2c8   :  { %914 = vrot.lane.b32.xlu0 %v1724_v59, %s1611_s23 }
 0x2ca   :  { %510 = vrot.lane.b32.xlu1 %v261_v54, %s1611_s23 }
 0x2cc   :  { %1015 = vrot.lane.b32.xlu0 %v1724_v59, %s1612_s24 }
 0x2ce   :  { %563 = vrot.lane.b32.xlu1 %v260_v49, %s1612_s24 }
 0x2d2   :  { %611 = vrot.lane.b32.xlu1 %v261_v54, %s1612_s24 }
 0x2d6   :  { %764 = vrot.lane.b32.xlu1 %v661_v60, %s1610_s3 }
 0x2da   :  { %866 = vrot.lane.b32.xlu1 %v661_v60, %s1611_s23 }
 0x2de   :  { %967 = vrot.lane.b32.xlu1 %v661_v60, %s1612_s24 }
 0x330   :  { %v269_v61 = vpop.permute.xlu0 %268 }
 0x331   :  { %v276_v62 = vsel %vm274_vm2, %v269_v61, 0 }
 0x332   :  { %1441 = vmatpush3.bf16.msra.mxu1 %v276_v62 }
 0x333   :  { %1452 = vmatprep.subr.bf16.mxu1 %v1607_v1 }
 0x334   :  { %v320_v0 = vpop.permute.xlu1 %319 }
 0x335   :  { %v325_v2 = vsel %vm274_vm2, %v320_v0, 0  ;;  %1443 = vmatmul.mubr.msk.bf16.vlgmr.msra.gmra.mxu1 %vm270_vm3, %v1338_v63 }
 0x336   :  { %1447 = vmatpush3.bf16.msra.mxu0 %v325_v2  ;;  %1453 = vmatpush3.bf16.msra.mxu1 %v371_v5  ;;  %v814_v27 = vpop.permute.xlu0 %813 }
 0x337   :  { %1458 = vmatprep.subr.bf16.mxu0 %v1607_v1  ;;  %1454 = vmatprep.mubr.msk.bf16.mxu1 %vm1608_vm0, %v1607_v1  ;;  %v819_v29 = vsel %vm274_vm2, %v814_v27, 0 }
 0x338   :  { %v463_v7 = vpop.permute.xlu1 %462  ;;  %1464 = vmatprep.subr.bf16.mxu1 %v1607_v1 }
 0x339   :  { %1449 = vmatmul.mubr.msk.bf16.vlgmr.msra.gmra.mxu0 %vm270_vm3, %v1339_v6  ;;  %v468_v11 = vsel %vm274_vm2, %v463_v7, 0 }
 0x33a   :  { %1459 = vmatpush3.bf16.msra.mxu0 %v417_v8  ;;  %1460 = vmatprep.mubr.msk.bf16.mxu0 %vm1608_vm0, %v1607_v1  ;;  %v915_v33 = vpop.permute.xlu0 %914 }
 0x33b   :  { %1470 = vmatprep.subr.bf16.mxu0 %v1607_v1  ;;  %v920_v35 = vsel %vm274_vm2, %v915_v33, 0 }
 0x33c   :  { %v511_v10 = vpop.permute.xlu1 %510 }
 0x33d   :  { %1455 = vmatmul.mubr.msk.bf16.vlgmr.msra.gmra.mxu1 %vm270_vm3, %v262_v9  ;;  %v516_v14 = vsel %vm274_vm2, %v511_v10, 0 }
 0x33e   :  { %1465 = vmatpush3.bf16.msra.mxu1 %v468_v11  ;;  %1466 = vmatprep.mubr.msk.bf16.mxu1 %vm1608_vm0, %v1607_v1  ;;  %v1016_v39 = vpop.permute.xlu0 %1015 }
 0x33f   :  { %1476 = vmatprep.subr.bf16.mxu1 %v1607_v1  ;;  %v1021_v42 = vsel %vm274_vm2, %v1016_v39, 0 }
 0x340   :  { %v564_v13 = vpop.permute.xlu1 %563 }
 0x341   :  { %1461 = vmatmul.mubr.msk.bf16.vlgmr.msra.gmra.mxu0 %vm270_vm3, %v263_v12  ;;  %v569_v16 = vsel %vm274_vm2, %v564_v13, 0 }
 0x342   :  { %1471 = vmatpush3.bf16.msra.mxu0 %v516_v14  ;;  %1472 = vmatprep.mubr.msk.bf16.mxu0 %vm1608_vm0, %v1607_v1 }
 0x343   :  { %1482 = vmatprep.subr.bf16.mxu0 %v1607_v1 }
 0x344   :  { %v612_v17 = vpop.permute.xlu1 %611 }
 0x345   :  { %1467 = vmatmul.mubr.msk.bf16.vlgmr.msra.gmra.mxu1 %vm270_vm3, %v1344_v15  ;;  %v617_v19 = vsel %vm274_vm2, %v612_v17, 0 }
 0x346   :  { %1477 = vmatpush3.bf16.msra.mxu1 %v569_v16  ;;  %1478 = vmatprep.mubr.msk.bf16.mxu1 %vm1608_vm0, %v1607_v1 }
 0x347   :  { %1488 = vmatprep.subr.bf16.mxu1 %v1607_v1 }
 0x348   :  { %v765_v24 = vpop.permute.xlu1 %764 }
 0x349   :  { %1473 = vmatmul.mubr.msk.bf16.vlgmr.msra.gmra.mxu0 %vm270_vm3, %v1345_v18  ;;  %v770_v26 = vsel %vm274_vm2, %v765_v24, 0 }
 0x34a   :  { %1483 = vmatpush3.bf16.msra.mxu0 %v617_v19  ;;  %1484 = vmatprep.mubr.msk.bf16.mxu0 %vm1608_vm0, %v1607_v1 }
 0x34b   :  { %1494 = vmatprep.subr.bf16.mxu0 %v1607_v1 }
 0x34c   :  { %v867_v30 = vpop.permute.xlu1 %866 }
 0x34d   :  { %1479 = vmatmul.mubr.msk.bf16.vlgmr.msra.gmra.mxu1 %vm270_vm3, %v1348_v20  ;;  %v872_v32 = vsel %vm274_vm2, %v867_v30, 0 }
 0x34e   :  { %1489 = vmatpush3.bf16.msra.mxu1 %v670_v21  ;;  %1490 = vmatprep.mubr.msk.bf16.mxu1 %vm1608_vm0, %v1607_v1 }
 0x34f   :  { %1500 = vmatprep.subr.bf16.mxu1 %v1607_v1 }
 0x350   :  { %v968_v36 = vpop.permute.xlu1 %967 }
 0x351   :  { %1485 = vmatmul.mubr.msk.bf16.vlgmr.msra.gmra.mxu0 %vm270_vm3, %v1349_v22  ;;  %v973_v38 = vsel %vm274_vm2, %v968_v36, 0 }
 0x352   :  { %1495 = vmatpush3.bf16.msra.mxu0 %v716_v23  ;;  %1496 = vmatprep.mubr.msk.bf16.mxu0 %vm1608_vm0, %v1607_v1 }
 0x353   :  { %1506 = vmatprep.subr.bf16.mxu0 %v1607_v1 }
 0x355   :  { %1491 = vmatmul.mubr.msk.bf16.vlgmr.msra.gmra.mxu1 %vm270_vm3, %v1352_v25 }
 0x356   :  { %1501 = vmatpush3.bf16.msra.mxu1 %v770_v26  ;;  %1502 = vmatprep.mubr.msk.bf16.mxu1 %vm1608_vm0, %v1607_v1 }
 0x357   :  { %1512 = vmatprep.subr.bf16.mxu1 %v1607_v1 }
 0x359   :  { %1497 = vmatmul.mubr.msk.bf16.vlgmr.msra.gmra.mxu0 %vm270_vm3, %v1353_v28 }
 0x35a   :  { %1507 = vmatpush3.bf16.msra.mxu0 %v819_v29  ;;  %1508 = vmatprep.mubr.msk.bf16.mxu0 %vm1608_vm0, %v1607_v1 }
 0x35b   :  { %1518 = vmatprep.subr.bf16.mxu0 %v1607_v1 }
 0x35d   :  { %1503 = vmatmul.mubr.msk.bf16.vlgmr.msra.gmra.mxu1 %vm270_vm3, %v1356_v31 }
 0x35e   :  { %1513 = vmatpush3.bf16.msra.mxu1 %v872_v32  ;;  %1514 = vmatprep.mubr.msk.bf16.mxu1 %vm1608_vm0, %v1607_v1 }
 0x35f   :  { %1524 = vmatprep.subr.bf16.mxu1 %v1607_v1 }
 0x361   :  { %1509 = vmatmul.mubr.msk.bf16.vlgmr.msra.gmra.mxu0 %vm270_vm3, %v1357_v34 }
 0x362   :  { %1519 = vmatpush3.bf16.msra.mxu0 %v920_v35  ;;  %1520 = vmatprep.mubr.msk.bf16.mxu0 %vm1608_vm0, %v1607_v1 }
 0x363   :  { %1530 = vmatprep.subr.bf16.mxu0 %v1607_v1 }
 0x365   :  { %1515 = vmatmul.mubr.msk.bf16.vlgmr.msra.gmra.mxu1 %vm270_vm3, %v1360_v37 }
 0x366   :  { %1525 = vmatpush3.bf16.msra.mxu1 %v973_v38  ;;  %1526 = vmatprep.mubr.msk.bf16.mxu1 %vm1608_vm0, %v1607_v1 }
 0x367   :  { %1536 = vmatprep.subr.bf16.mxu1 %v1607_v1 }
 0x369   :  { %1521 = vmatmul.mubr.msk.bf16.vlgmr.msra.gmra.mxu0 %vm270_vm3, %v1361_v40 }
 0x36a   :  { %1531 = vmatpush3.bf16.msra.mxu0 %v1021_v42  ;;  %1532 = vmatprep.mubr.msk.bf16.mxu0 %vm1608_vm0, %v1607_v1 }
 0x36b   :  { %1542 = vmatprep.subr.bf16.mxu0 %v1607_v1 }
 0x36d   :  { %1527 = vmatmul.mubr.msk.bf16.vlgmr.msra.gmra.mxu1 %vm270_vm3, %v1364_v43 }
 0x36e   :  { %1537 = vmatpush3.bf16.msra.mxu1 %v1074_v44  ;;  %1538 = vmatprep.mubr.msk.bf16.mxu1 %vm1608_vm0, %v1607_v1 }
 0x36f   :  { %1548 = vmatprep.subr.bf16.mxu1 %v1607_v1 }
 0x371   :  { %1533 = vmatmul.mubr.msk.bf16.vlgmr.msra.gmra.mxu0 %vm270_vm3, %v1365_v45 }
 0x372   :  { %1543 = vmatpush3.bf16.msra.mxu0 %v1722_v58  ;;  %1544 = vmatprep.mubr.msk.bf16.mxu0 %vm1608_vm0, %v1607_v1 }
 0x375   :  { %1539 = vmatmul.mubr.msk.bf16.vlgmr.msra.gmra.mxu1 %vm270_vm3, %v1368_v46 }
 0x376   :  { %1552 = vmatprep.mubr.msk.bf16.mxu1 %vm1608_vm0, %v1607_v1 }
 0x379   :  { %1545 = vmatmul.mubr.msk.bf16.vlgmr.msra.gmra.mxu0 %vm270_vm3, %v1369_v47 }
 0x3f5   :  { %v312_v48 = vpop.f32.mrf.mxu1 }
 0x3f7   :  { %v1444_v49 = vpop.f32.mrf.mxu1 }
 0x3f9   :  { %v315_v50 = vpop.f32.mrf.mxu1  ;;  %v361_v51 = vpop.f32.mrf.mxu0 }
 0x3fb   :  { %v1445_v52 = vpop.f32.mrf.mxu1  ;;  %v1450_v53 = vpop.f32.mrf.mxu0 }
 0x3fd   :  { %v364_v54 = vpop.f32.mrf.mxu0  ;;  %v407_v55 = vpop.f32.mrf.mxu1 }
 0x3fe   :  { %v408_v37 = vadd.f32 %v407_v55, %v312_v48 }
 0x3ff   :  { %v1451_v56 = vpop.f32.mrf.mxu0  ;;  %v1456_v57 = vpop.f32.mrf.mxu1 }
 0x401   :  { %v410_v58 = vpop.f32.mrf.mxu1  ;;  %v453_v59 = vpop.f32.mrf.mxu0 }
 0x402   :  { %v454_v43 = vadd.f32 %v453_v59, %v361_v51 }
 0x403   :  { %v1457_v60 = vpop.f32.mrf.mxu1  ;;  %v1462_v61 = vpop.f32.mrf.mxu0 }
 0x405   :  { %v456_v62 = vpop.f32.mrf.mxu0  ;;  %v504_v63 = vpop.f32.mrf.mxu1 }
 0x406   :  { %v558_v40 = vadd.f32 %v504_v63, %v408_v37 }
 0x407   :  { %v1463_v0 = vpop.f32.mrf.mxu0  ;;  %v1468_v2 = vpop.f32.mrf.mxu1 }
 0x409   :  { %v507_v5 = vpop.f32.mrf.mxu1  ;;  %v552_v6 = vpop.f32.mrf.mxu0 }
 0x40a   :  { %v559_v47 = vadd.f32 %v552_v6, %v454_v43 }
 0x40b   :  { %v1469_v7 = vpop.f32.mrf.mxu1  ;;  %v1474_v8 = vpop.f32.mrf.mxu0 }
 0x40d   :  { %v555_v9 = vpop.f32.mrf.mxu0  ;;  %v605_v10 = vpop.f32.mrf.mxu1 }
 0x40e   :  { %v659_v44 = vadd.f32 %v605_v10, %v558_v40 }
 0x40f   :  { %v1475_v11 = vpop.f32.mrf.mxu0  ;;  %v1480_v12 = vpop.f32.mrf.mxu1 }
 0x411   :  { %v608_v13 = vpop.f32.mrf.mxu1  ;;  %v653_v14 = vpop.f32.mrf.mxu0 }
 0x412   :  { %v660_v53 = vadd.f32 %v653_v14, %v559_v47 }
 0x413   :  { %v1481_v15 = vpop.f32.mrf.mxu1  ;;  %v1486_v16 = vpop.f32.mrf.mxu0 }
 0x415   :  { %v656_v17 = vpop.f32.mrf.mxu0  ;;  %v706_v18 = vpop.f32.mrf.mxu1 }
 0x416   :  { %v758_v49 = vadd.f32 %v706_v18, %v659_v44 }
 0x417   :  { %v1487_v19 = vpop.f32.mrf.mxu0  ;;  %v1492_v20 = vpop.f32.mrf.mxu1 }
 0x419   :  { %v709_v21 = vpop.f32.mrf.mxu1  ;;  %v752_v22 = vpop.f32.mrf.mxu0 }
 0x41a   :  { %v759_v58 = vadd.f32 %v752_v22, %v660_v53 }
 0x41b   :  { %v1493_v23 = vpop.f32.mrf.mxu1  ;;  %v1498_v24 = vpop.f32.mrf.mxu0 }
 0x41d   :  { %v755_v25 = vpop.f32.mrf.mxu0  ;;  %v806_v26 = vpop.f32.mrf.mxu1 }
 0x41e   :  { %v861_v54 = vadd.f32 %v806_v26, %v758_v49 }
 0x41f   :  { %v1499_v27 = vpop.f32.mrf.mxu0  ;;  %v1504_v28 = vpop.f32.mrf.mxu1 }
 0x421   :  { %v809_v29 = vpop.f32.mrf.mxu1  ;;  %v855_v30 = vpop.f32.mrf.mxu0 }
 0x422   :  { %v862_v61 = vadd.f32 %v855_v30, %v759_v58  ;;  %v1372_v29 = vld [vmem:[%s1913_s5 + $0x8] sm:$0xff] }
 0x423   :  { %v1505_v31 = vpop.f32.mrf.mxu1  ;;  %v1510_v32 = vpop.f32.mrf.mxu0  ;;  %v1577_v30 = vld [vmem:[%s1912_s4 + $0x8] sm:$0xff]  }
 0x424   :  { %1549 = vmatpush3.bf16.msra.mxu1 %v1577_v30 }
 0x425   :  { %v858_v33 = vpop.f32.mrf.mxu0  ;;  %v908_v34 = vpop.f32.mrf.mxu1  ;;  %1550 = vmatprep.subr.bf16.mxu1 %v1607_v1 }
 0x426   :  { %v962_v60 = vadd.f32 %v908_v34, %v861_v54  ;;  %v1373_v33 = vld [vmem:[%s1914_s6 + $0x8] sm:$0xff] }
 0x427   :  { %v1511_v35 = vpop.f32.mrf.mxu0  ;;  %v1516_v36 = vpop.f32.mrf.mxu1 }
 0x428   :  { %v1578_v36 = vld [vmem:[%s1912_s4] sm:$0xff]  }
 0x429   :  { %v911_v38 = vpop.f32.mrf.mxu1  ;;  %v956_v39 = vpop.f32.mrf.mxu0  ;;  %1551 = vmatpush3.bf16.msra.mxu1 %v1578_v36 }
 0x42a   :  { %v963_v51 = vadd.f32 %v956_v39, %v862_v61 }
 0x42b   :  { %v1517_v41 = vpop.f32.mrf.mxu1  ;;  %v1522_v42 = vpop.f32.mrf.mxu0 }
 0x42d   :  { %v959_v45 = vpop.f32.mrf.mxu0  ;;  %v1009_v46 = vpop.f32.mrf.mxu1 }
 0x42e   :  { %v1063_v62 = vadd.f32 %v1009_v46, %v962_v60 }
 0x42f   :  { %v1523_v50 = vpop.f32.mrf.mxu0  ;;  %v1528_v52 = vpop.f32.mrf.mxu1 }
 0x431   :  { %v1012_v56 = vpop.f32.mrf.mxu1  ;;  %v1057_v57 = vpop.f32.mrf.mxu0 }
 0x432   :  { %v1064_v6 = vadd.f32 %v1057_v57, %v963_v51 }
 0x433   :  { %v1529_v48 = vpop.f32.mrf.mxu1  ;;  %v1534_v55 = vpop.f32.mrf.mxu0 }
 0x435   :  { %v1060_v63 = vpop.f32.mrf.mxu0  ;;  %v1110_v0 = vpop.f32.mrf.mxu1 }
 0x436   :  { %v1162_v59 = vadd.f32 %v1110_v0, %v1063_v62 }
 0x437   :  { %v1535_v2 = vpop.f32.mrf.mxu0  ;;  %v1540_v5 = vpop.f32.mrf.mxu1 }
 0x438   :  { %v1170_v10 = vmul.f32 %v1162_v59, %v1162_v59  ;;  %v1164_v13 = vsel %vm47_vm1, %v1162_v59, 0.0 }
 0x439   :  { %v1156_v7 = vpop.f32.mrf.mxu0  ;;  %v1113_v8 = vpop.f32.mrf.mxu1 }
 0x43a   :  { %v1163_v9 = vadd.f32 %v1156_v7, %v1064_v6  ;;  %v1172_v18 = vsel %vm47_vm1, %v1170_v10, 0.0  ;;  %v1378_v6 = vld [vmem:[%s1914_s6 + $0x10] sm:$0xff] }
 0x43b   :  { %v1546_v11 = vpop.f32.mrf.mxu0  ;;  %v1541_v12 = vpop.f32.mrf.mxu1 }
 0x43c   :  { %v1165_v14 = vsel %vm47_vm1, %v1163_v9, 0.0  ;;  %v1171_v15 = vmul.f32 %v1163_v9, %v1163_v9 }
 0x43d   :  { %v1159_v16 = vpop.f32.mrf.mxu0  ;;  %v1166_v17 = vadd.f32 %v1165_v14, %v1164_v13 }
 0x43e   :  { %v1173_v19 = vsel %vm47_vm1, %v1171_v15, 0.0 }
 0x43f   :  { %1167 = vadd.xlane.f32.xlu1 %v1166_v17  ;;  %v1547_v20 = vpop.f32.mrf.mxu0  ;;  %v1174_v21 = vadd.f32 %v1173_v19, %v1172_v18 }
 0x441   :  { %1175 = vadd.xlane.f32.xlu0 %v1174_v21 }
 0x4c8   :  { %v1168_v22 = vpop.xlane.xlu1 %1167 }
 0x4c9   :  { %v1169_v23 = vmul.f32 0.015625, %v1168_v22 }
 0x4ca   :  { %v1176_v24 = vpop.xlane.xlu0 %1175 }
 0x4cb   :  { %v1178_v25 = vmul.f32 %v1169_v23, %v1169_v23  ;;  %v1177_v26 = vmul.f32 0.015625, %v1176_v24 }
 0x4cd   :  { %v1179_v27 = vsub.f32 %v1177_v26, %v1178_v25 }
 0x4cf   :  { %v1182_v28 = vadd.f32 1e-05, %v1179_v27 }
 0x4d1   :  { %1581 = vrsqrt.f32 %v1182_v28 }
 0x4de   :  { %v1582_v31 = vpop.eup %1581 }
 0x4df   :  { %v1184_v32 = vmul.f32 %v1582_v31, %v1372_v29 }
 0x4e1   :  { %1191 = vperm.xlu0 %1566, %v1184_v32   ;;  %v1187_v34 = vmul.f32 %v1184_v32, %v1169_v23 }
 0x4e3   :  { %v1188_v35 = vsub.f32 %v1373_v33, %v1187_v34 }
 0x4e5   :  { %1198 = vperm.xlu1 %1565, %v1188_v35  }
 0x55c   :  { %v1192_v37 = vpop.permute.xlu0 %1191 }
 0x55d   :  { %v1194_v38 = vmul.f32 %v1192_v37, %v1162_v59  ;;  %v1195_v39 = vmul.f32 %v1192_v37, %v1163_v9  ;;  %v1377_v59 = vld [vmem:[%s1913_s5 + $0x10] sm:$0xff]  ;;  %s1585_s5 = scalar_lea.vmem %s1317_s21, 256 }
 0x55e   :  { %p1586_p0 = scmp.ne.s32.totalorder %s1317_s21, %s1585_s5  ;;  %p1591_p2 = scmp.lt.s32.totalorder %s1585_s5, %s1585_s5 }
 0x560   :  { %v1199_v40 = vpop.permute.xlu1 %1198  ;;  %p1592_p3 = por %p1591_p2, %p1590_p1 }
 0x561   :  { %v1201_v41 = vadd.f32 %v1199_v40, %v1194_v38  ;;  %v1202_v42 = vadd.f32 %v1199_v40, %v1195_v39 }
 0x562   :  { %p1593_p4 = pnand %p1592_p3, %p1586_p0 }
 0x563   :  { %v1203_v43 = vmax.f32 %v1201_v41, 0.0  ;;  %v1204_v44 = vmax.f32 %v1202_v42, 0.0 }
 0x565   :  { %v1205_v45 = vpack.c.bf16 %v1204_v44, %v1203_v43 }
 0x567   :  { %1553 = vmatmul.mubr.msk.bf16.vlgmr.msra.gmra.mxu1 %vm47_vm1, %v1205_v45 }
 0x627   :  { %v1259_v1 = vpop.f32.mrf.mxu1 }
 0x628   :  { %v1272_v47 = vmul.f32 %v1259_v1, %v1259_v1  ;;  %v1266_v52 = vsel %vm47_vm1, %v1259_v1, 0.0 }
 0x629   :  { %v1554_v46 = vpop.f32.mrf.mxu1 }
 0x62a   :  { %v1274_v57 = vsel %vm47_vm1, %v1272_v47, 0.0 }
 0x62b   :  { %v1262_v49 = vpop.f32.mrf.mxu1 }
 0x62c   :  { %v1273_v50 = vmul.f32 %v1262_v49, %v1262_v49  ;;  %v1267_v53 = vsel %vm47_vm1, %v1262_v49, 0.0 }
 0x62d   :  { %v1555_v54 = vpop.f32.mrf.mxu1  ;;  %v1268_v56 = vadd.f32 %v1267_v53, %v1266_v52 }
 0x62e   :  { %v1275_v58 = vsel %vm47_vm1, %v1273_v50, 0.0 }
 0x62f   :  { %1269 = vadd.xlane.f32.xlu1 %v1268_v56  ;;  %v1276_v60 = vadd.f32 %v1275_v58, %v1274_v57 }
 0x631   :  { %1277 = vadd.xlane.f32.xlu0 %v1276_v60 }
 0x6b8   :  { %v1270_v48 = vpop.xlane.xlu1 %1269 }
 0x6b9   :  { %v1271_v55 = vmul.f32 0.015625, %v1270_v48 }
 0x6ba   :  { %v1278_v61 = vpop.xlane.xlu0 %1277 }
 0x6bb   :  { %v1280_v62 = vmul.f32 %v1271_v55, %v1271_v55  ;;  %v1279_v63 = vmul.f32 0.015625, %v1278_v61 }
 0x6bd   :  { %v1281_v0 = vsub.f32 %v1279_v63, %v1280_v62 }
 0x6bf   :  { %v1284_v51 = vadd.f32 1e-05, %v1281_v0 }
 0x6c1   :  { %1583 = vrsqrt.f32 %v1284_v51 }
 0x6ce   :  { %v1584_v2 = vpop.eup %1583 }
 0x6cf   :  { %v1286_v5 = vmul.f32 %v1584_v2, %v1377_v59 }
 0x6d1   :  { %1293 = vperm.xlu1 %1565, %v1286_v5   ;;  %v1289_v7 = vmul.f32 %v1286_v5, %v1271_v55 }
 0x6d3   :  { %v1290_v8 = vsub.f32 %v1378_v6, %v1289_v7 }
 0x6d5   :  { %1300 = vperm.xlu1 %1565, %v1290_v8  }
 0x74c   :  { %v1294_v9 = vpop.permute.xlu1 %1293 }
 0x74d   :  { %v1296_v10 = vmul.f32 %v1294_v9, %v1259_v1  ;;  %v1297_v11 = vmul.f32 %v1294_v9, %v1262_v49 }
 0x750   :  { %v1301_v12 = vpop.permute.xlu1 %1300 }
 0x751   :  { %v1303_v13 = vadd.f32 %v1301_v12, %v1296_v10  ;;  %v1304_v14 = vadd.f32 %v1301_v12, %v1297_v11 }
 0x753   :  { %v1305_v15 = vadd.f32 %v1303_v13, %v1668_v3  ;;  %v1306_v16 = vadd.f32 %v1304_v14, %v1673_v4 }
 0x755   :  { %v1307_v17 = vmax.f32 %v1305_v15, 0.0  ;;  %v1308_v18 = vmax.f32 %v1306_v16, 0.0 }
 0x757   :  { %1309 = vst.msk [vmem:[#allocation2] sm:$0xff] %vm47_vm1, %v1307_v17  ;;  %1310 = vst.msk [vmem:[#allocation2 + $0x8] sm:$0xff] %vm47_vm1, %v1308_v18 }
 0x758   :  { %1596 = shalt.err (!%p1593_p4)
}
 0x759   :  { %s1614_s6 = smov 128   ;;  %s1615_s22 = smov 8  }
 0x75a   :  { %1322 = dma.vmem_to_hbm [thread:$0]  %s1317_s21, 256, %s1915_s7, [#allocation3], %s1614_s6, %s1614_s6, %s1615_s22  }
 0x75b   :  { %1605 = dma.done.wait [#allocation3], 256  }
 0x75c   :  { %1606 = vsyncadd [#allocation3], 4294967040 }
 0x75d   :  { %1326 = vsyncpa [#allocation3], 1 }

</bundles_post_ra>
